<compile_context>
chip_gen: v6e
topology: v6e:2x2x1
jax: 0.10.0
libtpu: 0.0.40
codegen_flags: <defaults>
</compile_context>

<pallas_src>
import functools
import math

import jax
import jax.numpy as jnp
from jax.experimental import pallas as pl
from jax.experimental.pallas import tpu as pltpu


# ------------------------------ small helpers -------------------------------

def _round_up(x, m):
    return (x + m - 1) // m * m


def _mult8_divisor(n, cap):
    # n is a multiple of 8; largest multiple-of-8 divisor of n that is <= cap.
    t = min(n, max(cap, 8))
    t -= t % 8
    while n % t:
        t -= 8
    return t


def _vmem_capacity_bytes():
    try:
        return int(pltpu.get_tpu_info().vmem_capacity_bytes)
    except Exception:
        return 64 * 1024 * 1024          # conservative fallback (v7x per-core)


def _vmem_limit(need_bytes, capacity):
    # Explicit scoped-VMEM limit: at least the default 32 MiB, never above device.
    return int(min(capacity, max(2 * need_bytes, 32 * 1024 * 1024)))


def _pick_time_block(s_len, b_tile, h4, h, vmem_bytes):
    """VMEM-budget-driven time-block size (review: no hard-coded 16 cap).

    Per extra timestep we pay ~ b_tile*(4H + 3H) f32 of VMEM (gx staging row,
    out staging columns, double-buffered out block). Capped at 32 to bound the
    statically-unrolled recurrence code size.
    """
    per_t = 4 * b_tile * (h4 + 3 * h)
    budget = max(vmem_bytes // 8, 1 << 20)          # generous headroom
    cap = int(max(1, min(budget // per_t, 32, s_len)))
    if s_len <= cap:
        return s_len                                 # single-block: no padding
    # lane-dense out block (b_tile, t_blk*H) must have t_blk*H % 128 == 0
    m = 128 // math.gcd(h, 128)
    cands = list(range(m, cap + 1, m))
    if not cands:
        return s_len                                 # fallback: one full block
    # minimise time padding, prefer the largest block on ties
    return min(cands, key=lambda t: (-(-s_len // t) * t, -t))


# ------------------------------ Pallas kernels ------------------------------

def gtable_proj_kernel(tab_ref, wih_ref, b_ref, out_ref):
    """Gtable tile = emb_table_tile @ W_ih^T + (b_ih + b_hh)."""
    out_ref[...] = (
        jnp.dot(tab_ref[...], wih_ref[...], preferred_element_type=jnp.float32)
        + b_ref[...])


def lstm_fused_kernel(ids_ref, gtab_ref, whh_ref,
                      out_ref, hn_ref, cn_ref,
                      h_sc, c_sc, gx_sc, out_sc,
                      *, hidden, t_blk, b_tile, batch_pad, seq_true, mask_tail):
    """Fused embedding-row gather + t_blk LSTM timesteps per grid step.

    ids_ref : (Sp*Bp,) int32 in SMEM (scalar prefetch)
    gtab_ref: (Vp, 4H)  pre-projected embedding table (resident)
    whh_ref : (H, 4H)   W_hh^T, gate columns permuted to [i,f,o,g] (resident)
    out_ref : (b_tile, t_blk*H) lane-dense hidden-output slab for this block
    hn_ref, cn_ref: (b_tile, H) final states (resident across time axis)
    h_sc, c_sc    : (b_tile, H) carried state
    gx_sc         : (t_blk*b_tile, 4H) gathered gate inputs for this block
    out_sc        : (b_tile, t_blk*H) staging for the lane-dense output store
    """
    bi = pl.program_id(0)            # batch tile   ("parallel": v7x 2-TC split)
    tb = pl.program_id(1)            # time block   ("arbitrary": sequential)
    n_rows = t_blk * b_tile

    @pl.when(tb == 0)
    def _():
        h_sc[...] = jnp.zeros_like(h_sc)
        c_sc[...] = jnp.zeros_like(c_sc)

    # ---- stage 1: gather this block's pre-projected gate inputs -------------
    # gx_sc[tt*b_tile + j, :] = Gtable[ ids[tb*t_blk+tt, bi*b_tile+j], : ]
    # VMEM->VMEM row copies driven by SMEM scalars (no per-row grid/DMA
    # overhead), staged off the serial h->h chain.
    def gather_one(k, carry):
        t_glob = tb * t_blk + k // b_tile
        b_glob = bi * b_tile + k % b_tile
        idx = ids_ref[t_glob * batch_pad + b_glob]
        gx_sc[pl.ds(k, 1), :] = gtab_ref[pl.ds(idx, 1), :]
        return carry

    jax.lax.fori_loop(0, n_rows, gather_one, 0, unroll=8)

    # ---- stage 2: the serial recurrence --------------------------------------
    whh = whh_ref[...]                       # resident recurrent weight (loaded once)
    # TODO-style note: for H >= 128, holding whh in MXU weight regs via
    # pltpu.matmul_push_rhs/acc_lhs/pop avoids re-pushing the RHS every step.
    h_prev = h_sc[...]
    c_prev = c_sc[...]

    # Static unroll: t_blk is small (<=32) so all slice indices are static.
    # (For much larger b_tile*H, prefer a partially-unrolled fori_loop.)
    for tt in range(t_blk):
        gates = gx_sc[tt * b_tile:(tt + 1) * b_tile, :] + jnp.dot(
            h_prev, whh, preferred_element_type=jnp.float32)
        # gate columns are [i, f, o, g]: one wide sigmoid + one tanh
        sig = jax.nn.sigmoid(gates[:, :3 * hidden])
        i_g = sig[:, :hidden]
        f_g = sig[:, hidden:2 * hidden]
        o_g = sig[:, 2 * hidden:3 * hidden]
        g_g = jnp.tanh(gates[:, 3 * hidden:])
        c_new = f_g * c_prev + i_g * g_g
        h_new = o_g * jnp.tanh(c_new)
        if mask_tail:
            # time padding: freeze carries past the true sequence end so that
            # h_n / c_n captured on the last grid step equal step seq_true-1.
            valid = (tb * t_blk + tt) < seq_true
            h_new = jnp.where(valid, h_new, h_prev)
            c_new = jnp.where(valid, c_new, c_prev)
        # pack timestep tt into lane-dense columns [tt*H, (tt+1)*H)
        out_sc[:, tt * hidden:(tt + 1) * hidden] = h_new
        h_prev, c_prev = h_new, c_new

    h_sc[...] = h_prev
    c_sc[...] = c_prev
    out_ref[...] = out_sc[...]               # one lane-dense store per block

    # Only the final h/c matter: gate the resident-output stores to the last
    # time block of this batch tile.
    @pl.when(tb == pl.num_programs(1) - 1)
    def _():
        hn_ref[...] = h_prev
        cn_ref[...] = c_prev


# -------------------------------- wrappers ----------------------------------

def _project_table(table_pad, wih_t, bias_row, vmem_cap):
    """Gtable = emb_table @ W_ih^T + bias, tiled over vocab rows."""
    v_pad, e = table_pad.shape
    h4 = wih_t.shape[1]
    tv = _mult8_divisor(v_pad, 512)          # big row tiles (mem-bound matmul)
    need = 8 * (tv * e + e * h4 + h4 + tv * h4)
    return pl.pallas_call(
        gtable_proj_kernel,
        out_shape=jax.ShapeDtypeStruct((v_pad, h4), jnp.float32),
        grid_spec=pltpu.PrefetchScalarGridSpec(
            num_scalar_prefetch=0,
            grid=(v_pad // tv,),
            in_specs=[pl.BlockSpec((tv, e), lambda i: (i, 0)),
                      pl.BlockSpec((e, h4), lambda i: (0, 0)),
                      pl.BlockSpec((1, h4), lambda i: (0, 0))],
            out_specs=pl.BlockSpec((tv, h4), lambda i: (i, 0)),
        ),
        compiler_params=pltpu.CompilerParams(
            dimension_semantics=("parallel",),
            vmem_limit_bytes=_vmem_limit(need, vmem_cap)),
    )(table_pad, wih_t, bias_row)


def _lstm_fused(ids_flat, gtable, whh_t, *, hidden, t_blk, b_tile, b_pad,
                s_pad, s_true, vmem_cap):
    v_pad, h4 = gtable.shape
    n_btiles = b_pad // b_tile
    n_tblocks = s_pad // t_blk

    kernel = functools.partial(
        lstm_fused_kernel, hidden=hidden, t_blk=t_blk, b_tile=b_tile,
        batch_pad=b_pad, seq_true=s_true, mask_tail=(s_pad != s_true))

    need = 4 * (2 * v_pad * h4 + 2 * hidden * h4            # gtable + whh buffers
                + 2 * b_tile * t_blk * hidden                # out block (double buf)
                + 4 * b_tile * hidden                        # hn, cn buffers
                + t_blk * b_tile * h4 + b_tile * t_blk * hidden  # gx_sc, out_sc
                + 2 * b_tile * hidden)                       # h_sc, c_sc

    out, h_n, c_n = pl.pallas_call(
        kernel,
        out_shape=(jax.ShapeDtypeStruct((b_pad, s_pad * hidden), jnp.float32),
                   jax.ShapeDtypeStruct((b_pad, hidden), jnp.float32),
                   jax.ShapeDtypeStruct((b_pad, hidden), jnp.float32)),
        grid_spec=pltpu.PrefetchScalarGridSpec(
            num_scalar_prefetch=1,
            grid=(n_btiles, n_tblocks),
            in_specs=[pl.BlockSpec((v_pad, h4), lambda bi, tb, ids: (0, 0)),
                      pl.BlockSpec((hidden, h4), lambda bi, tb, ids: (0, 0))],
            out_specs=[pl.BlockSpec((b_tile, t_blk * hidden),
                                    lambda bi, tb, ids: (bi, tb)),
                       pl.BlockSpec((b_tile, hidden), lambda bi, tb, ids: (bi, 0)),
                       pl.BlockSpec((b_tile, hidden), lambda bi, tb, ids: (bi, 0))],
            scratch_shapes=[pltpu.VMEM((b_tile, hidden), jnp.float32),
                            pltpu.VMEM((b_tile, hidden), jnp.float32),
                            pltpu.VMEM((t_blk * b_tile, h4), jnp.float32),
                            pltpu.VMEM((b_tile, t_blk * hidden), jnp.float32)]),
        compiler_params=pltpu.CompilerParams(
            dimension_semantics=("parallel", "arbitrary"),
            vmem_limit_bytes=_vmem_limit(need, vmem_cap)),
    )(ids_flat, gtable, whh_t)
    return out, h_n, c_n


def dummy_word_lang_model(x, emb_table, w_ih, w_hh, b_ih, b_hh):
    s, b = x.shape
    v, e = emb_table.shape
    h = w_hh.shape[1]
    h4 = 4 * h

    # Gate permutation (PyTorch order [i,f,g,o] -> kernel order [i,f,o,g]):
    # lets the kernel apply sigmoid to one contiguous 3H slice.
    perm = jnp.concatenate([jnp.arange(0, 2 * h),
                            jnp.arange(3 * h, 4 * h),
                            jnp.arange(2 * h, 3 * h)])
    w_ih_p = jnp.asarray(w_ih, jnp.float32)[perm, :]
    w_hh_p = jnp.asarray(w_hh, jnp.float32)[perm, :]
    bias_p = (jnp.asarray(b_ih, jnp.float32) + jnp.asarray(b_hh, jnp.float32))[perm]

    # Padding / tiling (generation-aware).
    b_pad = max(8, _round_up(b, 8))                       # sublane alignment
    v_pad = max(8, _round_up(v, 8))
    vmem_cap = _vmem_capacity_bytes()
    b_tile = b_pad // 2 if (b_pad % 16 == 0) else b_pad   # 2 batch tiles -> v7x 2 TCs
    t_blk = _pick_time_block(s, b_tile, h4, h, vmem_cap)
    s_pad = _round_up(s, t_blk)

    # Token ids: padded batch rows / timesteps use token 0 (their effect on
    # h_n/c_n is masked in-kernel and their outputs are sliced away). clip is
    # purely a VMEM-index guard; like nn.Embedding, OOB ids are caller error.
    ids = jnp.zeros((s_pad, b_pad), jnp.int32).at[:s, :b].set(x.astype(jnp.int32))
    ids = jnp.clip(ids, 0, v - 1)
    ids_flat = ids.reshape(s_pad * b_pad)

    table_pad = jnp.zeros((v_pad, e), jnp.float32).at[:v].set(
        jnp.asarray(emb_table, jnp.float32))

    # Kernel 1: pre-projected embedding table (algebraic fusion of embedding
    # gather + input projection). Assumes V*4H*4 bytes fits comfortably in VMEM.
    gtable = _project_table(table_pad, w_ih_p.T, bias_p.reshape(1, h4), vmem_cap)

    # Kernel 2: fused gather + blocked LSTM recurrence.
    out_p, hn_p, cn_p = _lstm_fused(
        ids_flat, gtable, w_hh_p.T,
        hidden=h, t_blk=t_blk, b_tile=b_tile, b_pad=b_pad,
        s_pad=s_pad, s_true=s, vmem_cap=vmem_cap)

    # Undo the lane-dense (Bp, Sp*H) packing -> (S, B, H) (layout plumbing only).
    out = out_p.reshape(b_pad, s_pad, h).transpose(1, 0, 2)[:s, :b, :]
    h_n = hn_p[None, :b, :]
    c_n = cn_p[None, :b, :]
    return out, (h_n, c_n)


# ------------------------------ JAX reference --------------------------------

def lstm_ref(emb, w_ih, w_hh, b_ih, b_hh):
    h = w_hh.shape[1]
    b = emb.shape[1]
    hi = jax.lax.Precision.HIGHEST

    def step(carry, x_t):
        h_prev, c_prev = carry
        gates = (jnp.dot(x_t, w_ih.T, precision=hi) + b_ih
                 + jnp.dot(h_prev, w_hh.T, precision=hi) + b_hh)
        i, f, g, o = jnp.split(gates, 4, axis=-1)
        i = jax.nn.sigmoid(i)
        f = jax.nn.sigmoid(f)
        g = jnp.tanh(g)
        o = jax.nn.sigmoid(o)
        c = f * c_prev + i * g
        h_new = o * jnp.tanh(c)
        return (h_new, c), h_new

    init = (jnp.zeros((b, h), jnp.float32), jnp.zeros((b, h), jnp.float32))
    (h_n, c_n), out = jax.lax.scan(step, init, emb)
    return out, h_n[None], c_n[None]


# ---------------------------------- main -------------------------------------

if __name__ == "__main__":
    VOCAB, EMBED, HIDDEN = 50, 32, 32
    SEQ, BATCH = 8, 2

    key = jax.random.PRNGKey(0)
    k_tab, k_wih, k_whh, k_bih, k_bhh, k_tok = jax.random.split(key, 6)

    # nn.Embedding: N(0, 1); nn.LSTM: U(-1/sqrt(H), 1/sqrt(H))
    emb_table = jax.random.normal(k_tab, (VOCAB, EMBED), jnp.float32)
    scale = 1.0 / jnp.sqrt(jnp.float32(HIDDEN))
    w_ih = jax.random.uniform(k_wih, (4 * HIDDEN, EMBED), jnp.float32, -scale, scale)
    w_hh = jax.random.uniform(k_whh, (4 * HIDDEN, HIDDEN), jnp.float32, -scale, scale)
    b_ih = jax.random.uniform(k_bih, (4 * HIDDEN,), jnp.float32, -scale, scale)
    b_hh = jax.random.uniform(k_bhh, (4 * HIDDEN,), jnp.float32, -scale, scale)

    x = jax.random.randint(k_tok, (SEQ, BATCH), 0, VOCAB, jnp.int32)

    out, (h_n, c_n) = dummy_word_lang_model(x, emb_table, w_ih, w_hh, b_ih, b_hh)
    jax.block_until_ready((out, h_n, c_n))

    # correctness check vs pure-JAX reference
    emb_ref = emb_table[x]                       # (S, B, E)
    out_r, h_r, c_r = lstm_ref(emb_ref, w_ih, w_hh, b_ih, b_hh)
    assert out.shape == (SEQ, BATCH, HIDDEN)
    assert h_n.shape == (1, BATCH, HIDDEN) and c_n.shape == (1, BATCH, HIDDEN)
    assert jnp.allclose(out, out_r, atol=5e-3, rtol=5e-3)
    assert jnp.allclose(h_n, h_r, atol=5e-3, rtol=5e-3)
    assert jnp.allclose(c_n, c_r, atol=5e-3, rtol=5e-3)

    print("KERNEL_OK")
</pallas_src>

<mosaic_0001>
module attributes {stable_mosaic.version = 11 : i64} {
  func.func @gtable_proj_kernel(%arg0: i32, %arg1: memref<56x32xf32, #tpu.memory_space<vmem>>, %arg2: memref<32x128xf32, #tpu.memory_space<vmem>>, %arg3: memref<1x128xf32, #tpu.memory_space<vmem>>, %arg4: memref<56x128xf32, #tpu.memory_space<vmem>>) attributes {dimension_semantics = [#tpu.dimension_semantics<parallel>], iteration_bounds = array<i64: 1>, scalar_prefetch = 0 : i64, scratch_operands = 0 : i64, tpu.core_type = #tpu.core_type<tc>, window_params = [{transform_indices = @transform_0, window_bounds = array<i64: 56, 32>}, {pipeline_mode = #tpu.pipeline_mode<synchronous>, transform_indices = @transform_1, window_bounds = array<i64: 32, 128>}, {pipeline_mode = #tpu.pipeline_mode<synchronous>, transform_indices = @transform_2, window_bounds = array<i64: 1, 128>}, {transform_indices = @transform_3, window_bounds = array<i64: 56, 128>}]} {
    %c0 = arith.constant 0 : index
    %c0_0 = arith.constant 0 : index
    %0 = vector.load %arg1[%c0, %c0_0] : memref<56x32xf32, #tpu.memory_space<vmem>>, vector<56x32xf32>
    %c0_1 = arith.constant 0 : index
    %c0_2 = arith.constant 0 : index
    %1 = vector.load %arg2[%c0_1, %c0_2] : memref<32x128xf32, #tpu.memory_space<vmem>>, vector<32x128xf32>
    %cst = arith.constant dense<0.000000e+00> : vector<56x128xf32>
    %2 = tpu.matmul %0, %1, %cst {dimension_numbers = #tpu.dot_dimension_numbers<[1], [0], [0], [1], [0, 0, 1, 1], [], []>} : vector<56x32xf32>, vector<32x128xf32>, vector<56x128xf32> -> vector<56x128xf32>
    %c0_3 = arith.constant 0 : index
    %c0_4 = arith.constant 0 : index
    %3 = vector.load %arg3[%c0_3, %c0_4] : memref<1x128xf32, #tpu.memory_space<vmem>>, vector<1x128xf32>
    %4 = vector.broadcast %3 : vector<1x128xf32> to vector<56x128xf32>
    %5 = arith.addf %2, %4 : vector<56x128xf32>
    %c0_5 = arith.constant 0 : index
    %c0_6 = arith.constant 0 : index
    %6 = vector.load %arg4[%c0_5, %c0_6] : memref<56x128xf32, #tpu.memory_space<vmem>>, vector<56x128xf32>
    tpu.vector_store %arg4[%c0_5, %c0_6], %5 {strides = array<i32>} : memref<56x128xf32, #tpu.memory_space<vmem>>, vector<56x128xf32>,
    return
  }
  func.func @transform_0(%arg0: i32) -> (i32, i32) {
    %c0_i32 = arith.constant 0 : i32
    %c0_i32_0 = arith.constant 0 : i32
    return %arg0, %c0_i32 : i32, i32
  }
  func.func @transform_1(%arg0: i32) -> (i32, i32) {
    %c0_i32 = arith.constant 0 : i32
    %c0_i32_0 = arith.constant 0 : i32
    %c0_i32_1 = arith.constant 0 : i32
    return %c0_i32, %c0_i32_0 : i32, i32
  }
  func.func @transform_2(%arg0: i32) -> (i32, i32) {
    %c0_i32 = arith.constant 0 : i32
    %c0_i32_0 = arith.constant 0 : i32
    %c0_i32_1 = arith.constant 0 : i32
    return %c0_i32, %c0_i32_0 : i32, i32
  }
  func.func @transform_3(%arg0: i32) -> (i32, i32) {
    %c0_i32 = arith.constant 0 : i32
    %c0_i32_0 = arith.constant 0 : i32
    return %arg0, %c0_i32 : i32, i32
  }
}

</mosaic_0001>

<bundles_post_ra>
// kernel: tpu_custom_call.1
= control target key start
LH: loop header
LB: loop body
LE: loop exit
PB: predicated region body
PF: predicated region fallthrough
CT: control target
= control target key end

     0   :  { %v261_v1 = vmov 0.0   ;;  %s339_s0 = inlined_call_operand.vmem [shape: f32[56,32], index: 0, kind: input, shape index: {}]   ;;  %s340_s1 = inlined_call_operand.vmem [shape: f32[32,128], index: 1, kind: input, shape index: {}]   ;;  %s341_s2 = inlined_call_operand.vmem [shape: f32[1,128], index: 2, kind: input, shape index: {}]   ;;  %s342_s3 = inlined_call_operand.hbm [shape: f32[56,128], index: 3, kind: output, shape index: {}]  }
   0x1   :  { %v25_v0 = vld [vmem:[%s340_s1 + $0x18] sm:$0xff]  ;;  %197 = vmatprep.subr.mxu0 %v261_v1  ;;  %226 = vmatprep.subr.mxu1 %v261_v1  ;;  %v24_v2 = vld [vmem:[%s340_s1 + $0x10] sm:$0xff]  ;;  %v23_v3 = vld [vmem:[%s340_s1 + $0x8] sm:$0xff] }
   0x2   :  { %198 = vmatpush3.msra.mxu0 %v25_v0  ;;  %230 = vmatpush3.msra.mxu1 %v25_v0 }
   0x3   :  { %199 = vmatprep.subr.mxu0 %v261_v1  ;;  %227 = vmatprep.subr.mxu1 %v261_v1 }
   0x4   :  { %200 = vmatpush3.msra.mxu0 %v24_v2  ;;  %231 = vmatpush3.msra.mxu1 %v24_v2 }
   0x5   :  { %8 = vsyncpa [#allocation3], 0  ;;  %201 = vmatprep.subr.mxu0 %v261_v1  ;;  %228 = vmatprep.subr.mxu1 %v261_v1  ;;  %v22_v4 = vld [vmem:[%s340_s1] sm:$0xff]  ;;  %vm33_vm0 = vcmask 261120   ;;  %vm262_vm1 = vmmov 0   ;;  %v16_v7 = vld [vmem:[%s339_s0 + $0x8] sm:$0xff] }
   0x6   :  { %202 = vmatpush3.msra.mxu0 %v23_v3  ;;  %232 = vmatpush3.msra.mxu1 %v23_v3  ;;  %v15_v5 = vld [vmem:[%s339_s0] sm:$0xff]  ;;  %v20_v8 = vld [vmem:[%s339_s0 + $0x28] sm:$0xff]  ;;  %v17_v9 = vld [vmem:[%s339_s0 + $0x10] sm:$0xff] }
   0x7   :  { %203 = vmatprep.subr.mxu0 %v261_v1  ;;  %205 = vmatprep.mubr.msk.f32.mxu0 %vm262_vm1, %v261_v1  ;;  %v19_v6 = vld [vmem:[%s339_s0 + $0x20] sm:$0xff]  ;;  %v21_v10 = vld [vmem:[%s339_s0 + $0x30] sm:$0xff]  ;;  %v18_v11 = vld [vmem:[%s339_s0 + $0x18] sm:$0xff]  ;;  %s263_s0 = smov [#allocation2]  }
   0x8   :  { %204 = vmatpush3.msra.mxu0 %v22_v4  ;;  %229 = vmatprep.subr.mxu1 %v261_v1  ;;  %v178_v12 = vld [vmem:[%s341_s2] ss:$0 sm:$0xff]  ;;  %s167_s2 = sshll.u32 %s263_s0, 4  ;;  %s168_s2 = int_to_ptr.vmem [resolvable:$true] %s167_s2 }
   0x9   :  { %206 = vmatmul.mubr.msk.f32.vlgmr.msra.gmra.mxu0 %vm33_vm0, %v15_v5  ;;  %233 = vmatpush3.msra.mxu1 %v22_v4  ;;  %s239_s8 = scalar_lea.vmem %s168_s2, 896  ;;  %p244_p1 = scmp.lt.s32.totalorder %s168_s2, %s168_s2 }
   0xa   :  { %217 = vmatprep.mubr.msk.f32.mxu1 %vm262_vm1, %v261_v1  ;;  %208 = vmatprep.mubr.msk.f32.mxu0 %vm262_vm1, %v261_v1  ;;  %p240_p0 = scmp.ne.s32.totalorder %s168_s2, %s239_s8  ;;  %p245_p2 = scmp.lt.s32.totalorder %s239_s8, %s239_s8 }
   0xb   :  { %218 = vmatmul.mubr.msk.f32.vlgmr.msra.gmra.mxu1 %vm33_vm0, %v19_v6 }
   0xc   :  { %220 = vmatprep.mubr.msk.f32.mxu1 %vm262_vm1, %v261_v1  ;;  %p246_p3 = por %p245_p2, %p244_p1 }
   0xd   :  { %209 = vmatmul.mubr.msk.f32.gmra.mxu0 %vm33_vm0, %v16_v7 }
   0xe   :  { %211 = vmatprep.mubr.msk.f32.mxu0 %vm262_vm1, %v261_v1  ;;  %p247_p4 = pnand %p246_p3, %p240_p0 }
   0xf   :  { %221 = vmatmul.mubr.msk.f32.gmra.mxu1 %vm33_vm0, %v20_v8 }
  0x10   :  { %223 = vmatprep.mubr.msk.f32.mxu1 %vm262_vm1, %v261_v1 }
  0x11   :  { %212 = vmatmul.mubr.msk.f32.gmra.mxu0 %vm33_vm0, %v17_v9 }
  0x12   :  { %214 = vmatprep.mubr.msk.f32.mxu0 %vm262_vm1, %v261_v1 }
  0x13   :  { %224 = vmatmul.mubr.msk.f32.gmra.mxu1 %vm33_vm0, %v21_v10 }
  0x15   :  { %215 = vmatmul.mubr.msk.f32.gmra.mxu0 %vm33_vm0, %v18_v11 }
  0xc9   :  { %v121_v13 = vpop.f32.mrf.mxu0 }
  0xca   :  { %v122_v14 = vadd.f32 %v178_v12, %v121_v13 }
  0xcb   :  { %v207_v15 = vpop.f32.mrf.mxu0  ;;  %v141_v16 = vpop.f32.mrf.mxu1 }
  0xcc   :  { %155 = vst [vmem:[#allocation2] sm:$0xff] %v122_v14  ;;  %v142_v17 = vadd.f32 %v178_v12, %v141_v16 }
  0xcd   :  { %v126_v18 = vpop.f32.mrf.mxu0  ;;  %v219_v19 = vpop.f32.mrf.mxu1 }
  0xce   :  { %159 = vst [vmem:[#allocation2 + $0x20] sm:$0xff] %v142_v17  ;;  %v127_v20 = vadd.f32 %v178_v12, %v126_v18 }
  0xcf   :  { %v210_v21 = vpop.f32.mrf.mxu0  ;;  %v146_v22 = vpop.f32.mrf.mxu1 }
  0xd0   :  { %156 = vst [vmem:[#allocation2 + $0x8] sm:$0xff] %v127_v20  ;;  %v147_v23 = vadd.f32 %v178_v12, %v146_v22 }
  0xd1   :  { %v131_v24 = vpop.f32.mrf.mxu0  ;;  %v222_v25 = vpop.f32.mrf.mxu1 }
  0xd2   :  { %160 = vst [vmem:[#allocation2 + $0x28] sm:$0xff] %v147_v23  ;;  %v132_v26 = vadd.f32 %v178_v12, %v131_v24 }
  0xd3   :  { %v213_v27 = vpop.f32.mrf.mxu0  ;;  %v151_v28 = vpop.f32.mrf.mxu1 }
  0xd4   :  { %157 = vst [vmem:[#allocation2 + $0x10] sm:$0xff] %v132_v26  ;;  %v152_v29 = vadd.f32 %v178_v12, %v151_v28 }
  0xd5   :  { %v136_v30 = vpop.f32.mrf.mxu0  ;;  %v225_v31 = vpop.f32.mrf.mxu1 }
  0xd6   :  { %161 = vst [vmem:[#allocation2 + $0x30] sm:$0xff] %v152_v29  ;;  %v137_v32 = vadd.f32 %v178_v12, %v136_v30 }
  0xd7   :  { %v216_v33 = vpop.f32.mrf.mxu0 }
  0xd8   :  { %158 = vst [vmem:[#allocation2 + $0x18] sm:$0xff] %v137_v32 }
  0xd9   :  { %250 = shalt.err (!%p247_p4)
}
  0xda   :  { %s264_s9 = smov 128   ;;  %s265_s10 = smov 8  }
  0xdb   :  { %173 = dma.vmem_to_hbm [thread:$0]  %s168_s2, 896, %s342_s3, [#allocation3], %s264_s9, %s264_s9, %s265_s10  }
  0xdc   :  { %259 = dma.done.wait [#allocation3], 896  }
  0xdd   :  { %260 = vsyncadd [#allocation3], 4294966400 }
  0xde   :  { %177 = vsyncpa [#allocation3], 1 }

</bundles_post_ra>
